<compile_context>
chip_gen: v7x
topology: tpu7x:2x2x1
jax: 0.10.0
libtpu: 0.0.40
codegen_flags: <defaults>
</compile_context>

<pallas_src>
import functools

import jax
import jax.numpy as jnp
from jax import lax
from jax.experimental import pallas as pl
from jax.experimental.pallas import tpu as pltpu

_LANE = 128
_SUB = 8


def _round_up(x, m):
    return ((x + m - 1) // m) * m


def _pad2d(x, rows, cols):
    return jnp.pad(x, ((0, rows - x.shape[0]), (0, cols - x.shape[1])))


def _pick_tm(n_pad, f_pad, budget_bytes=40 << 20):
    """Row-tile size: big as possible while 2x A-tile + resident Z/out fit VMEM."""
    tm = min(256, n_pad)
    while tm > _SUB:
        need = 4 * (2 * tm * n_pad + 2 * n_pad * f_pad + 2 * tm * f_pad)
        if need <= budget_bytes:
            break
        tm //= 2
    return max((tm // _SUB) * _SUB, _SUB)


def _vmem_limit(nbytes):
    return int(min(max(nbytes + (2 << 20), 8 << 20), 64 << 20))


# ----------------------------- kernels --------------------------------------


def _scaled_dense_kernel(dout_ref, x_ref, w_ref, z_ref):
    """z_tile = (d_out^{-1/2} * x_tile) @ W   (row-scaling on VPU, matmul on MXU)."""
    xs = x_ref[...] * dout_ref[...]                       # (TM, Fin) * (TM, 1)
    z_ref[...] = jnp.dot(xs, w_ref[...], preferred_element_type=jnp.float32)


def _aggregate_kernel(a_ref, z_ref, b_ref, o_ref, *, mm_dtype):
    """o_tile = relu( d_in^{-1/2} * (A_tile @ Z) + b ).

    d_in is derived from the A row tile already resident in VMEM, so the
    normalized adjacency never touches HBM.  Bias add + ReLU stay on the f32
    accumulator right before the single lane-dense store (pure VPU epilogue).
    """
    a = a_ref[...]                                        # (TM, Np)
    deg = jnp.sum(a, axis=1, keepdims=True)               # in-degree   (XLU)
    din = lax.rsqrt(jnp.maximum(deg, 1.0))                # clamp >= 1  (EUP)
    az = jnp.dot(a.astype(mm_dtype), z_ref[...].astype(mm_dtype),
                 preferred_element_type=jnp.float32)      # MXU, f32 accumulate
    o_ref[...] = jnp.maximum(din * az + b_ref[...], 0.0)  # f32 store, no cast


# --------------------------- layer wrapper ----------------------------------


def _gcn_layer(a_pad, dout_pad, x_pad, w_pad, b_pad, *, tm, mm_dtype):
    n_pad, fin_p = x_pad.shape
    fout_p = w_pad.shape[1]
    grid = (n_pad // tm,)

    # --- stage 1: Z = (d_out^{-1/2} * X) @ W  (row-tiled, parallel) ---
    dense_bytes = 4 * (2 * tm * (1 + fin_p + fout_p) + 2 * fin_p * fout_p)
    z = pl.pallas_call(
        _scaled_dense_kernel,
        out_shape=jax.ShapeDtypeStruct((n_pad, fout_p), jnp.float32),
        grid_spec=pltpu.PrefetchScalarGridSpec(
            num_scalar_prefetch=0,
            grid=grid,
            in_specs=[
                pl.BlockSpec((tm, 1), lambda i: (i, 0)),
                pl.BlockSpec((tm, fin_p), lambda i: (i, 0)),
                pl.BlockSpec((fin_p, fout_p), lambda i: (0, 0)),
            ],
            out_specs=pl.BlockSpec((tm, fout_p), lambda i: (i, 0)),
        ),
        compiler_params=pltpu.CompilerParams(
            dimension_semantics=("parallel",),
            vmem_limit_bytes=_vmem_limit(dense_bytes)),
        cost_estimate=pl.CostEstimate(
            flops=2 * n_pad * fin_p * fout_p,
            transcendentals=0,
            bytes_accessed=4 * (n_pad * fin_p + fin_p * fout_p
                                + n_pad * fout_p + n_pad)),
    )(dout_pad, x_pad, w_pad)

    # --- stage 2: H = relu(d_in^{-1/2} * (A @ Z) + b)  (row-tiled, parallel) ---
    agg_bytes = 4 * (2 * tm * n_pad + 2 * n_pad * fout_p
                     + 2 * tm * fout_p + fout_p)
    h = pl.pallas_call(
        functools.partial(_aggregate_kernel, mm_dtype=mm_dtype),
        out_shape=jax.ShapeDtypeStruct((n_pad, fout_p), jnp.float32),
        grid_spec=pltpu.PrefetchScalarGridSpec(
            num_scalar_prefetch=0,
            grid=grid,
            in_specs=[
                pl.BlockSpec((tm, n_pad), lambda i: (i, 0)),
                pl.BlockSpec((n_pad, fout_p), lambda i: (0, 0)),
                pl.BlockSpec((1, fout_p), lambda i: (0, 0)),
            ],
            out_specs=pl.BlockSpec((tm, fout_p), lambda i: (i, 0)),
        ),
        compiler_params=pltpu.CompilerParams(
            dimension_semantics=("parallel",),
            vmem_limit_bytes=_vmem_limit(agg_bytes)),
        cost_estimate=pl.CostEstimate(
            flops=2 * n_pad * n_pad * fout_p,
            transcendentals=n_pad,
            bytes_accessed=4 * (n_pad * n_pad + 2 * n_pad * fout_p + fout_p)),
    )(a_pad, z, b_pad)
    return h


# --------------------------- GRACE.forward ----------------------------------


def grace_forward(adj, feat, w1, b1, w2, b2, *, mm_dtype=jnp.float32):
    """GRACE.forward(g, feat) -> (h1, h2).

    adj  : (N, N)  dense adjacency, adj[i, j] = 1 if edge j -> i
    feat : (N, Fin); w1: (Fin, H), b1: (H,); w2: (H, C), b2: (C,)
    mm_dtype: operand dtype for the A @ Z MXU contraction (f32 or bf16).
    """
    n = adj.shape[0]
    fin = feat.shape[1]
    h_feats = w1.shape[1]
    n_classes = w2.shape[1]

    adj = adj.astype(jnp.float32)
    # Out-degree rsqrt (column sums). One O(N^2) read; no N x N Ahat written.
    dout = lax.rsqrt(jnp.maximum(jnp.sum(adj, axis=0), 1.0))       # (N,)

    # Tiling / padding.
    n0 = _round_up(n, _SUB)
    fin_p = _round_up(fin, _LANE)
    h_p = _round_up(h_feats, _LANE)
    c_p = _round_up(n_classes, _LANE)
    tm = _pick_tm(n0, max(fin_p, h_p, c_p))
    n_pad = _round_up(n, tm)

    a_pad = _pad2d(adj, n_pad, n_pad)
    x_pad = _pad2d(feat.astype(jnp.float32), n_pad, fin_p)
    dout_pad = _pad2d(dout.reshape(-1, 1), n_pad, 1)
    w1_pad = _pad2d(w1.astype(jnp.float32), fin_p, h_p)
    b1_pad = _pad2d(b1.reshape(1, -1).astype(jnp.float32), 1, h_p)
    w2_pad = _pad2d(w2.astype(jnp.float32), h_p, c_p)
    b2_pad = _pad2d(b2.reshape(1, -1).astype(jnp.float32), 1, c_p)

    h1_pad = _gcn_layer(a_pad, dout_pad, x_pad, w1_pad, b1_pad,
                        tm=tm, mm_dtype=mm_dtype)
    h2_pad = _gcn_layer(a_pad, dout_pad, h1_pad, w2_pad, b2_pad,
                        tm=tm, mm_dtype=mm_dtype)

    h1 = h1_pad[:n, :h_feats]
    h2 = h2_pad[:n, :n_classes]
    # GCN output has no singleton dims, so .squeeze() is a no-op (kept for parity).
    return jnp.squeeze(h1), jnp.squeeze(h2)


# ------------------------------- demo ----------------------------------------

if __name__ == "__main__":
    # Small shapes consistent with GRACE(encoder=GNN(in_feats, h_feats, num_classes)).
    # NOTE: at this toy scale plain XLA would beat any hand kernel (fixed per-call
    # overhead dominates); the tiling above targets the large-N regime.
    N, IN_FEATS, H_FEATS, NUM_CLASSES = 8, 16, 32, 4

    key = jax.random.PRNGKey(0)
    k_adj, k_feat, k_w1, k_w2 = jax.random.split(key, 4)

    # Deterministic random directed graph with self-loops.
    adj = (jax.random.uniform(k_adj, (N, N)) < 0.3).astype(jnp.float32)
    adj = jnp.maximum(adj, jnp.eye(N, dtype=jnp.float32))

    feat = jax.random.normal(k_feat, (N, IN_FEATS), dtype=jnp.float32)
    w1 = jax.random.normal(k_w1, (IN_FEATS, H_FEATS), dtype=jnp.float32) * 0.1
    b1 = jnp.zeros((H_FEATS,), dtype=jnp.float32)
    w2 = jax.random.normal(k_w2, (H_FEATS, NUM_CLASSES), dtype=jnp.float32) * 0.1
    b2 = jnp.zeros((NUM_CLASSES,), dtype=jnp.float32)

    fwd = jax.jit(functools.partial(grace_forward, mm_dtype=jnp.float32))
    h1, h2 = fwd(adj, feat, w1, b1, w2, b2)
    jax.block_until_ready((h1, h2))

    # Pure-JAX f32 reference (DGL GraphConv 'both' norm, degrees clamped >= 1).
    hp = jax.lax.Precision.HIGHEST
    deg_in = jnp.maximum(adj.sum(1), 1.0)
    deg_out = jnp.maximum(adj.sum(0), 1.0)
    ahat = (deg_in ** -0.5)[:, None] * adj * (deg_out ** -0.5)[None, :]
    r1 = jnp.maximum(
        jnp.dot(ahat, jnp.dot(feat, w1, precision=hp), precision=hp) + b1, 0.0)
    r2 = jnp.maximum(
        jnp.dot(ahat, jnp.dot(r1, w2, precision=hp), precision=hp) + b2, 0.0)

    assert h1.shape == (N, H_FEATS) and h2.shape == (N, NUM_CLASSES)
    assert jnp.allclose(h1, r1, atol=1e-4, rtol=1e-4), "h1 mismatch (f32)"
    assert jnp.allclose(h2, r2, atol=1e-4, rtol=1e-4), "h2 mismatch (f32)"

    # bf16-MXU fast path (v6e/v7x throughput option): same kernels, relaxed tol.
    fwd_bf16 = jax.jit(functools.partial(grace_forward, mm_dtype=jnp.bfloat16))
    g1, g2 = fwd_bf16(adj, feat, w1, b1, w2, b2)
    jax.block_until_ready((g1, g2))
    assert jnp.allclose(g1, r1, atol=5e-2, rtol=5e-2), "h1 mismatch (bf16 MXU)"
    assert jnp.allclose(g2, r2, atol=5e-2, rtol=5e-2), "h2 mismatch (bf16 MXU)"

    print("KERNEL_OK")
</pallas_src>

<mosaic_0001>
module attributes {stable_mosaic.version = 11 : i64} {
  func.func @_scaled_dense_kernel(%arg0: i32, %arg1: memref<8x1xf32, #tpu.memory_space<vmem>>, %arg2: memref<8x128xf32, #tpu.memory_space<vmem>>, %arg3: memref<128x128xf32, #tpu.memory_space<vmem>>, %arg4: memref<8x128xf32, #tpu.memory_space<vmem>>) attributes {dimension_semantics = [#tpu.dimension_semantics<parallel>], iteration_bounds = array<i64: 1>, scalar_prefetch = 0 : i64, scratch_operands = 0 : i64, tpu.core_type = #tpu.core_type<tc>, window_params = [{transform_indices = @transform_0, window_bounds = array<i64: 8, 1>}, {transform_indices = @transform_1, window_bounds = array<i64: 8, 128>}, {pipeline_mode = #tpu.pipeline_mode<synchronous>, transform_indices = @transform_2, window_bounds = array<i64: 128, 128>}, {transform_indices = @transform_3, window_bounds = array<i64: 8, 128>}]} {
    %c0 = arith.constant 0 : index
    %c0_0 = arith.constant 0 : index
    %0 = vector.load %arg2[%c0, %c0_0] : memref<8x128xf32, #tpu.memory_space<vmem>>, vector<8x128xf32>
    %c0_1 = arith.constant 0 : index
    %c0_2 = arith.constant 0 : index
    %1 = vector.load %arg1[%c0_1, %c0_2] : memref<8x1xf32, #tpu.memory_space<vmem>>, vector<8x1xf32>
    %2 = vector.broadcast %1 : vector<8x1xf32> to vector<8x128xf32>
    %3 = arith.mulf %0, %2 : vector<8x128xf32>
    %c0_3 = arith.constant 0 : index
    %c0_4 = arith.constant 0 : index
    %4 = vector.load %arg3[%c0_3, %c0_4] : memref<128x128xf32, #tpu.memory_space<vmem>>, vector<128x128xf32>
    %cst = arith.constant dense<0.000000e+00> : vector<8x128xf32>
    %5 = tpu.matmul %3, %4, %cst {dimension_numbers = #tpu.dot_dimension_numbers<[1], [0], [0], [1], [0, 0, 1, 1], [], []>} : vector<8x128xf32>, vector<128x128xf32>, vector<8x128xf32> -> vector<8x128xf32>
    %c0_5 = arith.constant 0 : index
    %c0_6 = arith.constant 0 : index
    %6 = vector.load %arg4[%c0_5, %c0_6] : memref<8x128xf32, #tpu.memory_space<vmem>>, vector<8x128xf32>
    tpu.vector_store %arg4[%c0_5, %c0_6], %5 {strides = array<i32>} : memref<8x128xf32, #tpu.memory_space<vmem>>, vector<8x128xf32>,
    return
  }
  func.func @transform_0(%arg0: i32) -> (i32, i32) {
    %c0_i32 = arith.constant 0 : i32
    %c0_i32_0 = arith.constant 0 : i32
    return %arg0, %c0_i32 : i32, i32
  }
  func.func @transform_1(%arg0: i32) -> (i32, i32) {
    %c0_i32 = arith.constant 0 : i32
    %c0_i32_0 = arith.constant 0 : i32
    return %arg0, %c0_i32 : i32, i32
  }
  func.func @transform_2(%arg0: i32) -> (i32, i32) {
    %c0_i32 = arith.constant 0 : i32
    %c0_i32_0 = arith.constant 0 : i32
    %c0_i32_1 = arith.constant 0 : i32
    return %c0_i32, %c0_i32_0 : i32, i32
  }
  func.func @transform_3(%arg0: i32) -> (i32, i32) {
    %c0_i32 = arith.constant 0 : i32
    %c0_i32_0 = arith.constant 0 : i32
    return %arg0, %c0_i32 : i32, i32
  }
}

module attributes {stable_mosaic.version = 11 : i64} {
  func.func @_aggregate_kernel(%arg0: i32, %arg1: memref<8x8xf32, #tpu.memory_space<vmem>>, %arg2: memref<8x128xf32, #tpu.memory_space<vmem>>, %arg3: memref<1x128xf32, #tpu.memory_space<vmem>>, %arg4: memref<8x128xf32, #tpu.memory_space<vmem>>) attributes {dimension_semantics = [#tpu.dimension_semantics<parallel>], iteration_bounds = array<i64: 1>, scalar_prefetch = 0 : i64, scratch_operands = 0 : i64, tpu.core_type = #tpu.core_type<tc>, window_params = [{transform_indices = @transform_0, window_bounds = array<i64: 8, 8>}, {pipeline_mode = #tpu.pipeline_mode<synchronous>, transform_indices = @transform_1, window_bounds = array<i64: 8, 128>}, {pipeline_mode = #tpu.pipeline_mode<synchronous>, transform_indices = @transform_2, window_bounds = array<i64: 1, 128>}, {transform_indices = @transform_3, window_bounds = array<i64: 8, 128>}]} {
    %c0 = arith.constant 0 : index
    %c0_0 = arith.constant 0 : index
    %0 = vector.load %arg1[%c0, %c0_0] : memref<8x8xf32, #tpu.memory_space<vmem>>, vector<8x8xf32>
    %cst = arith.constant dense<0.000000e+00> : vector<8xf32>
    %1 = vector.multi_reduction <add>, %0, %cst [1] : vector<8x8xf32> to vector<8xf32>
    %2 = vector.shape_cast %1 : vector<8xf32> to vector<8x1xf32>
    %cst_1 = arith.constant 1.000000e+00 : f32
    %3 = vector.broadcast %cst_1 : f32 to vector<8x1xf32>
    %4 = arith.maximumf %2, %3 : vector<8x1xf32>
    %5 = math.rsqrt %4 : vector<8x1xf32>
    %c0_2 = arith.constant 0 : index
    %c0_3 = arith.constant 0 : index
    %6 = vector.load %arg2[%c0_2, %c0_3] : memref<8x128xf32, #tpu.memory_space<vmem>>, vector<8x128xf32>
    %cst_4 = arith.constant dense<0.000000e+00> : vector<8x128xf32>
    %7 = tpu.matmul %0, %6, %cst_4 {dimension_numbers = #tpu.dot_dimension_numbers<[1], [0], [0], [1], [0, 0, 1, 1], [], []>} : vector<8x8xf32>, vector<8x128xf32>, vector<8x128xf32> -> vector<8x128xf32>
    %8 = vector.broadcast %5 : vector<8x1xf32> to vector<8x128xf32>
    %9 = arith.mulf %8, %7 : vector<8x128xf32>
    %c0_5 = arith.constant 0 : index
    %c0_6 = arith.constant 0 : index
    %10 = vector.load %arg3[%c0_5, %c0_6] : memref<1x128xf32, #tpu.memory_space<vmem>>, vector<1x128xf32>
    %11 = vector.broadcast %10 : vector<1x128xf32> to vector<8x128xf32>
    %12 = arith.addf %9, %11 : vector<8x128xf32>
    %cst_7 = arith.constant 0.000000e+00 : f32
    %13 = vector.broadcast %cst_7 : f32 to vector<8x128xf32>
    %14 = arith.maximumf %12, %13 : vector<8x128xf32>
    %c0_8 = arith.constant 0 : index
    %c0_9 = arith.constant 0 : index
    %15 = vector.load %arg4[%c0_8, %c0_9] : memref<8x128xf32, #tpu.memory_space<vmem>>, vector<8x128xf32>
    tpu.vector_store %arg4[%c0_8, %c0_9], %14 {strides = array<i32>} : memref<8x128xf32, #tpu.memory_space<vmem>>, vector<8x128xf32>,
    return
  }
  func.func @transform_0(%arg0: i32) -> (i32, i32) {
    %c0_i32 = arith.constant 0 : i32
    %c0_i32_0 = arith.constant 0 : i32
    return %arg0, %c0_i32 : i32, i32
  }
  func.func @transform_1(%arg0: i32) -> (i32, i32) {
    %c0_i32 = arith.constant 0 : i32
    %c0_i32_0 = arith.constant 0 : i32
    %c0_i32_1 = arith.constant 0 : i32
    return %c0_i32, %c0_i32_0 : i32, i32
  }
  func.func @transform_2(%arg0: i32) -> (i32, i32) {
    %c0_i32 = arith.constant 0 : i32
    %c0_i32_0 = arith.constant 0 : i32
    %c0_i32_1 = arith.constant 0 : i32
    return %c0_i32, %c0_i32_0 : i32, i32
  }
  func.func @transform_3(%arg0: i32) -> (i32, i32) {
    %c0_i32 = arith.constant 0 : i32
    %c0_i32_0 = arith.constant 0 : i32
    return %arg0, %c0_i32 : i32, i32
  }
}

</mosaic_0001>

<bundles_post_ra>
// kernel: grace_forward.4
= control target key start
LH: loop header
LB: loop body
LE: loop exit
PB: predicated region body
PF: predicated region fallthrough
CT: control target
= control target key end

     0   :  { %v194_v0 = vmov 0   ;;  %v195_v2 = vmov 0.0|0.0   ;;  %vm196_vm0 = vmmov 0   ;;  %v197_v8 = vmov 0.0   ;;  %s275_s0 = inlined_call_operand.vmem [shape: f32[8,1], index: 0, kind: input, shape index: {}]   ;;  %s276_s2 = inlined_call_operand.vmem [shape: f32[128,128], index: 2, kind: input, shape index: {}]   ;;  %s277_s1 = inlined_call_operand.vmem [shape: f32[8,128], index: 1, kind: input, shape index: {}]   ;;  %s278_s3 = inlined_call_operand.vmem [shape: f32[8,128], index: 3, kind: output, shape index: {}]  }
   0x1   :  { %193 = vset.pattern.permute.xlu0 %v194_v0  ;;  %v15_v1 = vld [vmem:[%s275_s0] sm:$0xff]  ;;  %165 = vmatprep.subr.bf16.mxu0 %v195_v2  ;;  %v23_v4 = vld [vmem:[%s276_s2 + $0x8] sm:$0xff]  ;;  %v24_v6 = vld [vmem:[%s276_s2 + $0x10] sm:$0xff] }
   0x2   :  { %v22_v3 = vld [vmem:[%s276_s2] sm:$0xff]  ;;  %18 = vperm.xlu0 %193, %v15_v1   ;;  %v25_v7 = vld [vmem:[%s276_s2 + $0x18] sm:$0xff]  ;;  %162 = vmatprep.mubr.msk.f32.mxu0 %vm196_vm0, %v197_v8  ;;  %v27_v11 = vld [vmem:[%s276_s2 + $0x28] sm:$0xff] }
   0x3   :  { %v166_v5 = vpack.c.bf16 %v23_v4, %v22_v3  ;;  %v169_v9 = vpack.c.bf16 %v25_v7, %v24_v6  ;;  %v26_v10 = vld [vmem:[%s276_s2 + $0x20] sm:$0xff]  ;;  %v28_v13 = vld [vmem:[%s276_s2 + $0x30] sm:$0xff]  ;;  %v29_v14 = vld [vmem:[%s276_s2 + $0x38] sm:$0xff] }
   0x4   :  { %v172_v12 = vpack.c.bf16 %v27_v11, %v26_v10  ;;  %v175_v15 = vpack.c.bf16 %v29_v14, %v28_v13  ;;  %v30_v16 = vld [vmem:[%s276_s2 + $0x40] sm:$0xff]  ;;  %v31_v17 = vld [vmem:[%s276_s2 + $0x48] sm:$0xff]  ;;  %v32_v19 = vld [vmem:[%s276_s2 + $0x50] sm:$0xff] }
   0x5   :  { %167 = vmatpush3.bf16.msra.mxu0 %v166_v5  ;;  %v178_v18 = vpack.c.bf16 %v31_v17, %v30_v16  ;;  %v33_v20 = vld [vmem:[%s276_s2 + $0x58] sm:$0xff]  ;;  %v34_v22 = vld [vmem:[%s276_s2 + $0x60] sm:$0xff]  ;;  %v35_v23 = vld [vmem:[%s276_s2 + $0x68] sm:$0xff] }
   0x6   :  { %168 = vmatprep.subr.bf16.mxu0 %v195_v2  ;;  %v181_v21 = vpack.c.bf16 %v33_v20, %v32_v19  ;;  %v184_v24 = vpack.c.bf16 %v35_v23, %v34_v22  ;;  %v36_v25 = vld [vmem:[%s276_s2 + $0x70] sm:$0xff]  ;;  %v37_v26 = vld [vmem:[%s276_s2 + $0x78] sm:$0xff]  ;;  %v14_v28 = vld [vmem:[%s277_s1] sm:$0xff] }
   0x7   :  { %v187_v27 = vpack.c.bf16 %v37_v26, %v36_v25 }
   0x9   :  { %170 = vmatpush3.bf16.msra.mxu0 %v169_v9 }
   0xa   :  { %171 = vmatprep.subr.bf16.mxu0 %v195_v2 }
   0xd   :  { %173 = vmatpush3.bf16.msra.mxu0 %v172_v12 }
   0xe   :  { %174 = vmatprep.subr.bf16.mxu0 %v195_v2 }
  0x11   :  { %176 = vmatpush3.bf16.msra.mxu0 %v175_v15 }
  0x12   :  { %177 = vmatprep.subr.bf16.mxu0 %v195_v2 }
  0x15   :  { %179 = vmatpush3.bf16.msra.mxu0 %v178_v18 }
  0x16   :  { %180 = vmatprep.subr.bf16.mxu0 %v195_v2 }
  0x19   :  { %182 = vmatpush3.bf16.msra.mxu0 %v181_v21 }
  0x1a   :  { %183 = vmatprep.subr.bf16.mxu0 %v195_v2 }
  0x1d   :  { %185 = vmatpush3.bf16.msra.mxu0 %v184_v24 }
  0x1e   :  { %186 = vmatprep.subr.bf16.mxu0 %v195_v2 }
  0x21   :  { %188 = vmatpush3.bf16.msra.mxu0 %v187_v27 }
  0x81   :  { %v19_v29 = vpop.permute.xlu0 %18 }
  0x82   :  { %v21_v30 = vmul.f32 %v19_v29, %v14_v28 }
  0x84   :  { %163 = vmatmul.mubr.f32.vlgmr.msra.gmra.mrb[0].mxu0 %v21_v30 }
 0x157   :  { %v104_v31 = vpop.f32.mrb[0].mxu0 }
 0x158   :  { %108 = vst [vmem:[%s278_s3] sm:$0xff] %v104_v31  ;;  %v164_v32 = vpop.f32.mrb[1].mxu0 }

// kernel: grace_forward.5
= control target key start
LH: loop header
LB: loop body
LE: loop exit
PB: predicated region body
PF: predicated region fallthrough
CT: control target
= control target key end

     0   :  { %vm15_vm0 = vcmask 64512   ;;  %v123_v0 = vmov 0.0   ;;  %vm124_vm1 = vmmov 0   ;;  %s157_s1 = inlined_call_operand.vmem [shape: f32[8,128], index: 1, kind: input, shape index: {}]   ;;  %s158_s0 = inlined_call_operand.vmem [shape: f32[8,8], index: 0, kind: input, shape index: {}]   ;;  %s159_s2 = inlined_call_operand.vmem [shape: f32[1,128], index: 2, kind: input, shape index: {}]   ;;  %s160_s3 = inlined_call_operand.vmem [shape: f32[8,128], index: 3, kind: output, shape index: {}]  }
   0x1   :  { %114 = vmatprep.subr.mxu0 %v123_v0  ;;  %v21_v1 = vld [vmem:[%s157_s1] sm:$0xff]  ;;  %116 = vmatprep.mubr.msk.f32.mxu0 %vm124_vm1, %v123_v0 }
   0x2   :  { %v14_v2 = vld [vmem:[%s158_s0] sm:$0xff]  ;;  %115 = vmatpush3.msra.mxu0 %v21_v1 }
   0x3   :  { %v16_v3 = vsel %vm15_vm0, %v14_v2, 0.0  ;;  %117 = vmatmul.mubr.msk.f32.vlgmr.msra.gmra.mrb[0].mxu0 %vm15_vm0, %v14_v2  ;;  %v111_v8 = vld [vmem:[%s159_s2] ss:$0 sm:$0xff] }
   0x4   :  { %17 = vadd.xlane.f32.xlu0 %v16_v3 }
  0x91   :  { %v18_v4 = vpop.xlane.xlu0 %17 }
  0x92   :  { %v19_v5 = vmax.f32 %v18_v4, 1.0 }
  0x94   :  { %121 = vrsqrt.f32 %v19_v5 }
  0x9e   :  { %v122_v6 = vpop.eup %121 }
  0xd6   :  { %v91_v7 = vpop.f32.mrb[0].mxu0 }
  0xd7   :  { %v95_v9 = vmul.f32 %v122_v6, %v91_v7  ;;  %v118_v10 = vpop.f32.mrb[1].mxu0 }
  0xd9   :  { %v103_v11 = vadd.f32 %v111_v8, %v95_v9 }
  0xdb   :  { %v104_v12 = vmax.f32 %v103_v11, 0.0 }
  0xdd   :  { %105 = vst [vmem:[%s160_s3] sm:$0xff] %v104_v12 }

</bundles_post_ra>
